<compile_context>
chip_gen: v5e
topology: v5e:2x2
jax: 0.10.0
libtpu: 0.0.40
codegen_flags: <defaults>
</compile_context>

<pallas_src>
import functools

import jax
import jax.numpy as jnp
from jax.experimental import pallas as pl
from jax.experimental.pallas import tpu as pltpu


def _round_up(x: int, m: int) -> int:
    return ((x + m - 1) // m) * m


def _vmem_capacity_bytes() -> int:
    try:
        return int(pltpu.get_tpu_info().vmem_capacity_bytes)
    except Exception:
        return 64 * 1024 * 1024  # conservative (v7x-sized) if query unavailable


def _mlp_kernel(x_ref, w1_ref, b1_ref, w2_ref, b2_ref, o_ref):
    # hidden = relu(x @ W1 + b1) -- f32 accumulation regardless of input dtype
    h = jnp.dot(x_ref[...], w1_ref[...], preferred_element_type=jnp.float32)
    h = jnp.maximum(h + b1_ref[...], 0.0)          # (tb,H) + (1,H), f32 VPU
    # predict = hidden @ W2 + b2
    y = jnp.dot(h.astype(w2_ref.dtype), w2_ref[...],
                preferred_element_type=jnp.float32)
    o_ref[...] = (y + b2_ref[...]).astype(o_ref.dtype)


@functools.partial(jax.jit, static_argnames=("block_batch",))
def _net_forward(x, w1, b1, w2, b2, *, block_batch=512):
    """x:(B,F), w1:(F,H), b1:(1,H) f32, w2:(H,O), b2:(1,O) f32 -> (B,O) f32."""
    x = x.astype(w1.dtype)                 # no-op on the f32 path
    batch, n_feature = x.shape
    n_hidden = w1.shape[1]
    n_output = w2.shape[1]
    isz = w1.dtype.itemsize
    sub = 16 if isz < 4 else 8             # bf16 packs 16 rows per vreg sublane

    # ---- batch tile: >=2 grid steps when batch allows (v7x megacore), aligned.
    if batch <= sub:
        tb = batch                         # full-dim block: always legal
    else:
        tb = min(int(block_batch), max(sub, _round_up(pl.cdiv(batch, 2), sub)))

    # ---- VMEM footprint (VMEM buffers are internally padded to (sub,128)).
    def _pad_bytes(r, c, nbytes, rsub=8):
        return _round_up(r, rsub) * _round_up(c, 128) * nbytes

    def _footprint(tb_):
        return (2 * _pad_bytes(tb_, n_feature, isz, sub)        # x, 2 buffers
                + 2 * _pad_bytes(tb_, n_output, 4)              # out, 2 buffers
                + _pad_bytes(n_feature, n_hidden, isz, sub)     # W1 (1 buffer)
                + _pad_bytes(n_hidden, n_output, isz, sub)      # W2 (1 buffer)
                + _pad_bytes(1, n_hidden, 4)                    # b1
                + _pad_bytes(1, n_output, 4)                    # b2
                + _pad_bytes(tb_, n_hidden, 4)                  # hidden interm.
                + _pad_bytes(tb_, n_output, 4))                 # pre-store f32

    cap = _vmem_capacity_bytes()
    usable = cap - max(8 << 20, cap // 8)  # headroom for Mosaic internal scratch
    while _footprint(tb) > usable and tb > sub:
        tb = max(sub, _round_up(tb // 2, sub))
    # TODO(synk): if resident weights alone exceed `usable` (huge layers on
    # v7x), fall back to a hidden-dim-tiled grid with a VMEM f32 accumulator
    # (and/or fp8 weight storage); not needed at these shapes.

    grid = (pl.cdiv(batch, tb),)
    vmem_limit = int(max(16 << 20,
                         min(_footprint(tb) * 3 // 2 + (2 << 20), usable)))

    flops = 2 * batch * (n_feature * n_hidden + n_hidden * n_output)
    bytes_accessed = (batch * n_feature * isz
                      + n_feature * n_hidden * isz
                      + n_hidden * n_output * isz
                      + (n_hidden + n_output) * 4
                      + batch * n_output * 4)

    # VMEM-resident operands: constant index_map + single buffer.
    resident = functools.partial(pl.BlockSpec, pipeline_mode=pl.Buffered(1))

    return pl.pallas_call(
        _mlp_kernel,
        out_shape=jax.ShapeDtypeStruct((batch, n_output), jnp.float32),
        grid=grid,
        in_specs=[
            pl.BlockSpec((tb, n_feature), lambda i: (i, 0)),       # x: pipelined
            resident((n_feature, n_hidden), lambda i: (0, 0)),     # W1: resident
            resident((1, n_hidden), lambda i: (0, 0)),             # b1: resident
            resident((n_hidden, n_output), lambda i: (0, 0)),      # W2: resident
            resident((1, n_output), lambda i: (0, 0)),             # b2: resident
        ],
        out_specs=pl.BlockSpec((tb, n_output), lambda i: (i, 0)),
        compiler_params=pltpu.CompilerParams(
            dimension_semantics=("parallel",),   # shard batch over v7x's 2 TCs
            vmem_limit_bytes=vmem_limit,
        ),
        cost_estimate=pl.CostEstimate(
            flops=flops, transcendentals=0, bytes_accessed=bytes_accessed),
    )(x, w1, b1, w2, b2)


class PallasNet:
    """Pallas-TPU equivalent of the PyTorch `Net` (Linear -> ReLU -> Linear).

    Weight layout is (in_features, out_features): w1 = hidden.weight.T,
    b1 = hidden.bias, w2 = predict.weight.T, b2 = predict.bias.
    All one-time prep (dtype cast, bias reshape) happens here so the per-call
    path issues no extra HBM copies.
    """

    def __init__(self, w1, b1, w2, b2, *, compute_dtype=jnp.float32,
                 block_batch=512):
        cdt = jnp.dtype(compute_dtype)
        self.w1 = jnp.asarray(w1, cdt)
        self.w2 = jnp.asarray(w2, cdt)
        self.b1 = jnp.asarray(b1, jnp.float32).reshape(1, -1)  # bias add in f32
        self.b2 = jnp.asarray(b2, jnp.float32).reshape(1, -1)
        self.block_batch = int(block_batch)

    def __call__(self, x):
        return _net_forward(x, self.w1, self.b1, self.w2, self.b2,
                            block_batch=self.block_batch)


def _ref(x, w1, b1, w2, b2):
    return jnp.maximum(x @ w1 + b1, 0.0) @ w2 + b2


if __name__ == "__main__":
    key = jax.random.PRNGKey(0)
    kx, k1, k2, k3, k4, kx2 = jax.random.split(key, 6)

    # Shapes implied by Net(n_feature, n_hidden, n_output) at small scale.
    batch, n_feature, n_hidden, n_output = 8, 4, 32, 1
    x = jax.random.normal(kx, (batch, n_feature), dtype=jnp.float32)
    w1 = jax.random.normal(k1, (n_feature, n_hidden), dtype=jnp.float32) * 0.1
    b1 = jax.random.normal(k2, (n_hidden,), dtype=jnp.float32) * 0.1
    w2 = jax.random.normal(k3, (n_hidden, n_output), dtype=jnp.float32) * 0.1
    b2 = jax.random.normal(k4, (n_output,), dtype=jnp.float32) * 0.1

    # --- Test 1: exact f32 path, single-tile grid.
    net = PallasNet(w1, b1, w2, b2)
    out = jax.block_until_ready(net(x))
    assert out.shape == (batch, n_output)
    assert jnp.allclose(out, _ref(x, w1, b1, w2, b2), atol=1e-5, rtol=1e-5)

    # --- Test 2: multi-tile grid with a ragged last tile (no batch padding).
    batch2 = 300
    x2 = jax.random.normal(kx2, (batch2, n_feature), dtype=jnp.float32)
    net_tiled = PallasNet(w1, b1, w2, b2, block_batch=128)
    out2 = jax.block_until_ready(net_tiled(x2))
    assert out2.shape == (batch2, n_output)
    assert jnp.allclose(out2, _ref(x2, w1, b1, w2, b2), atol=1e-5, rtol=1e-5)

    # --- Test 3: bf16 operands / f32 accumulation (MXU fast path), loosened
    #     tolerance per bf16 precision.
    net_bf16 = PallasNet(w1, b1, w2, b2, block_batch=128,
                         compute_dtype=jnp.bfloat16)
    out3 = jax.block_until_ready(net_bf16(x2))
    assert out3.shape == (batch2, n_output)
    assert jnp.allclose(out3, _ref(x2, w1, b1, w2, b2), atol=5e-2, rtol=5e-2)

    print("KERNEL_OK")
</pallas_src>

<mosaic_0001>
module attributes {stable_mosaic.version = 11 : i64} {
  func.func @_mlp_kernel(%arg0: i32, %arg1: memref<8x4xf32, #tpu.memory_space<vmem>>, %arg2: memref<4x32xf32, #tpu.memory_space<vmem>>, %arg3: memref<1x32xf32, #tpu.memory_space<vmem>>, %arg4: memref<32x1xf32, #tpu.memory_space<vmem>>, %arg5: memref<1x1xf32, #tpu.memory_space<vmem>>, %arg6: memref<8x1xf32, #tpu.memory_space<vmem>>) attributes {dimension_semantics = [#tpu.dimension_semantics<parallel>], iteration_bounds = array<i64: 1>, scalar_prefetch = 0 : i64, scratch_operands = 0 : i64, tpu.core_type = #tpu.core_type<tc>, window_params = [{transform_indices = @transform_0, window_bounds = array<i64: 8, 4>}, {pipeline_mode = #tpu.pipeline_mode<synchronous>, transform_indices = @transform_1, window_bounds = array<i64: 4, 32>}, {pipeline_mode = #tpu.pipeline_mode<synchronous>, transform_indices = @transform_2, window_bounds = array<i64: 1, 32>}, {pipeline_mode = #tpu.pipeline_mode<synchronous>, transform_indices = @transform_3, window_bounds = array<i64: 32, 1>}, {pipeline_mode = #tpu.pipeline_mode<synchronous>, transform_indices = @transform_4, window_bounds = array<i64: 1, 1>}, {transform_indices = @transform_5, window_bounds = array<i64: 8, 1>}]} {
    %c0 = arith.constant 0 : index
    %c0_0 = arith.constant 0 : index
    %0 = vector.load %arg1[%c0, %c0_0] : memref<8x4xf32, #tpu.memory_space<vmem>>, vector<8x4xf32>
    %c0_1 = arith.constant 0 : index
    %c0_2 = arith.constant 0 : index
    %1 = vector.load %arg2[%c0_1, %c0_2] : memref<4x32xf32, #tpu.memory_space<vmem>>, vector<4x32xf32>
    %cst = arith.constant dense<0.000000e+00> : vector<8x32xf32>
    %2 = tpu.matmul %0, %1, %cst {dimension_numbers = #tpu.dot_dimension_numbers<[1], [0], [0], [1], [0, 0, 1, 1], [], []>} : vector<8x4xf32>, vector<4x32xf32>, vector<8x32xf32> -> vector<8x32xf32>
    %c0_3 = arith.constant 0 : index
    %c0_4 = arith.constant 0 : index
    %3 = vector.load %arg3[%c0_3, %c0_4] : memref<1x32xf32, #tpu.memory_space<vmem>>, vector<1x32xf32>
    %4 = vector.broadcast %3 : vector<1x32xf32> to vector<8x32xf32>
    %5 = arith.addf %2, %4 : vector<8x32xf32>
    %cst_5 = arith.constant 0.000000e+00 : f32
    %6 = vector.broadcast %cst_5 : f32 to vector<8x32xf32>
    %7 = arith.maximumf %5, %6 : vector<8x32xf32>
    %c0_6 = arith.constant 0 : index
    %c0_7 = arith.constant 0 : index
    %8 = vector.load %arg4[%c0_6, %c0_7] : memref<32x1xf32, #tpu.memory_space<vmem>>, vector<32x1xf32>
    %cst_8 = arith.constant dense<0.000000e+00> : vector<8x1xf32>
    %9 = tpu.matmul %7, %8, %cst_8 {dimension_numbers = #tpu.dot_dimension_numbers<[1], [0], [0], [1], [0, 0, 1, 1], [], []>} : vector<8x32xf32>, vector<32x1xf32>, vector<8x1xf32> -> vector<8x1xf32>
    %c0_9 = arith.constant 0 : index
    %c0_10 = arith.constant 0 : index
    %10 = vector.load %arg5[%c0_9, %c0_10] : memref<1x1xf32, #tpu.memory_space<vmem>>, vector<1x1xf32>
    %11 = vector.broadcast %10 : vector<1x1xf32> to vector<8x1xf32>
    %12 = arith.addf %9, %11 : vector<8x1xf32>
    %c0_11 = arith.constant 0 : index
    %c0_12 = arith.constant 0 : index
    %13 = vector.load %arg6[%c0_11, %c0_12] : memref<8x1xf32, #tpu.memory_space<vmem>>, vector<8x1xf32>
    tpu.vector_store %arg6[%c0_11, %c0_12], %12 {strides = array<i32>} : memref<8x1xf32, #tpu.memory_space<vmem>>, vector<8x1xf32>,
    return
  }
  func.func @transform_0(%arg0: i32) -> (i32, i32) {
    %c0_i32 = arith.constant 0 : i32
    %c0_i32_0 = arith.constant 0 : i32
    return %arg0, %c0_i32 : i32, i32
  }
  func.func @transform_1(%arg0: i32) -> (i32, i32) {
    %c0_i32 = arith.constant 0 : i32
    %c0_i32_0 = arith.constant 0 : i32
    %c0_i32_1 = arith.constant 0 : i32
    return %c0_i32, %c0_i32_0 : i32, i32
  }
  func.func @transform_2(%arg0: i32) -> (i32, i32) {
    %c0_i32 = arith.constant 0 : i32
    %c0_i32_0 = arith.constant 0 : i32
    %c0_i32_1 = arith.constant 0 : i32
    return %c0_i32, %c0_i32_0 : i32, i32
  }
  func.func @transform_3(%arg0: i32) -> (i32, i32) {
    %c0_i32 = arith.constant 0 : i32
    %c0_i32_0 = arith.constant 0 : i32
    %c0_i32_1 = arith.constant 0 : i32
    return %c0_i32, %c0_i32_0 : i32, i32
  }
  func.func @transform_4(%arg0: i32) -> (i32, i32) {
    %c0_i32 = arith.constant 0 : i32
    %c0_i32_0 = arith.constant 0 : i32
    %c0_i32_1 = arith.constant 0 : i32
    return %c0_i32, %c0_i32_0 : i32, i32
  }
  func.func @transform_5(%arg0: i32) -> (i32, i32) {
    %c0_i32 = arith.constant 0 : i32
    %c0_i32_0 = arith.constant 0 : i32
    return %arg0, %c0_i32 : i32, i32
  }
}

</mosaic_0001>

<bundles_post_ra>
// kernel: _net_forward.1
= control target key start
LH: loop header
LB: loop body
LE: loop exit
PB: predicated region body
PF: predicated region fallthrough
CT: control target
= control target key end

     0   :  { %vm32_vm0 = vcmask 1043456   ;;  %vm28_vm1 = vcmask 31744   ;;  %vm65_vm2 = vcmask 261120   ;;  %vm89_vm3 = vcmask 7168   ;;  %s157_s1 = inlined_call_operand.vmem [shape: f32[4,32], index: 1, kind: input, shape index: {}]   ;;  %s158_s0 = inlined_call_operand.vmem [shape: f32[8,4], index: 0, kind: input, shape index: {}]   ;;  %s159_s3 = inlined_call_operand.vmem [shape: f32[32,1], index: 3, kind: input, shape index: {}]   ;;  %s160_s2 = inlined_call_operand.vmem [shape: f32[1,32], index: 2, kind: input, shape index: {}]   ;;  %s161_s4 = inlined_call_operand.<no memory space> [shape: f32[1,1], index: 4, kind: input, shape index: {}]   ;;  %s162_s5 = inlined_call_operand.vmem [shape: f32[8,1], index: 5, kind: output, shape index: {}]  }
   0x1   :  { %v23_v0 = vld [vmem:[%s157_s1] sm:$0xf]  ;;  %v60_v2 = vld [vmem:[%s159_s3 + $0x18] sm:$0xff]  ;;  %v59_v3 = vld [vmem:[%s159_s3 + $0x10] sm:$0xff]  ;;  %v10_v6 = vstv %s161_s4 }
   0x2   :  { %v22_v1 = vld [vmem:[%s158_s0] sm:$0xff]  ;;  %95 = vmatpush.msk.msra.mxu0 %vm32_vm0, %v23_v0  ;;  %81 = vmatpush.msra.mxu1 %v60_v2  ;;  %v58_v4 = vld [vmem:[%s159_s3 + $0x8] sm:$0xff]  ;;  %11 = vst [vmem:[#allocation2] sm:$0x1] %v10_v6 }
   0x3   :  { %96 = vmatmul.msk.f32.vlgmr.msra.gmra.mxu0 %vm28_vm1, %v22_v1  ;;  %v57_v5 = vld [vmem:[%s159_s3] sm:$0xff] }
   0x4   :  { %82 = vmatpush.msra.mxu1 %v59_v3  ;;  %v98_v7 = vld [vmem:[%s160_s2] ss:$0 sm:$0xff] }
   0x6   :  { %83 = vmatpush.msra.mxu1 %v58_v4 }
   0x8   :  { %84 = vmatpush.msra.mxu1 %v57_v5 }
   0x9   :  { %v99_v11 = vld [vmem:[#allocation2] ss:$0 sm:$0xff] }
  0x80   :  { %v53_v8 = vpop.f32.mrf.mxu0 }
  0x81   :  { %v54_v9 = vadd.f32 %v98_v7, %v53_v8 }
  0x83   :  { %v56_v10 = vmax.f32 %v54_v9, 0.0 }
  0x85   :  { %97 = vmatmul.msk.f32.vlgmr.msra.gmra.mxu1 %vm65_vm2, %v56_v10 }
 0x102   :  { %v86_v12 = vpop.f32.mrf.mxu1 }
 0x103   :  { %v87_v13 = vadd.f32 %v99_v11, %v86_v12 }
 0x105   :  { %90 = vst.msk [vmem:[%s162_s5] sm:$0xff] %vm89_vm3, %v87_v13 }

</bundles_post_ra>
